<compile_context>
chip_gen: v6e
topology: v6e:2x2x1
jax: 0.10.0
libtpu: 0.0.40
codegen_flags: <defaults>
</compile_context>

<pallas_src>
import functools

import jax
import jax.numpy as jnp
from jax import lax
from jax.experimental import pallas as pl
from jax.experimental.pallas import tpu as pltpu

IGNORE_INDEX = 255
# NOTE: as in PyTorch, if num_classes ever exceeded 255, class id 255 would be conflated
# with ignore_index.


def _wce_kernel(logits_ref, tgt_ref, w_ref, out_ref, *, hw, tile_hw):
    """One grid step: a (C, tile_hw) lane-dense logits tile for image n.

    Writes sum_over_tile( weight * -log softmax(logits)[target] ) with ignore_index
    pixels and out-of-range (ragged tail) lanes masked out.
    """
    j = pl.program_id(1)

    logits = logits_ref[0].astype(jnp.float32)     # (C, T)  classes on sublanes, pixels on lanes
    tgt = tgt_ref[0]                               # (1, T)  int32
    w = w_ref[0].astype(jnp.float32)               # (1, T)

    # Numerically-stable log-sum-exp over the class (sublane) axis.
    m = jnp.max(logits, axis=0, keepdims=True)                                   # (1, T)
    lse = jnp.log(jnp.sum(jnp.exp(logits - m), axis=0, keepdims=True)) + m       # (1, T)

    # Target-class logit via one-hot select (no dynamic per-lane gather on TPU).
    cls = lax.broadcasted_iota(jnp.int32, logits.shape, 0)                        # (C, T)
    logit_t = jnp.sum(jnp.where(cls == tgt, logits, 0.0), axis=0, keepdims=True)  # (1, T)

    loss = lse - logit_t                                                          # (1, T)

    # Mask ignore_index pixels AND lanes past the true H*W extent (partial last block).
    # jnp.where *selects*, so garbage/inf/NaN in masked lanes cannot leak into the sum.
    pix = j * tile_hw + lax.broadcasted_iota(jnp.int32, (1, tile_hw), 1)
    mask = (tgt != IGNORE_INDEX) & (pix < hw)

    partial = jnp.sum(jnp.where(mask, loss * w, 0.0))                             # scalar f32
    out_ref[...] = jnp.broadcast_to(partial, out_ref.shape)                       # one full vreg store


@functools.partial(jax.jit, static_argnames=("tile_hw",))
def cross_entropy_2d_pixelwise_weighted(output, target, pixel_weight, tile_hw=131072):
    """output: (N, C, H, W) float logits; target: (N, H, W) int; pixel_weight: (N, H, W) float."""
    N, C, H, W = output.shape
    HW = H * W
    P = N * HW

    # NCHW -> (N, C, H*W): contiguous reshape, no transpose/pad passes over HBM.
    logits = output.reshape(N, C, HW)
    tgt = target.reshape(N, 1, HW).astype(jnp.int32)
    w = pixel_weight.reshape(N, 1, HW)

    # Choose the pixel (lane) tile: multiple of 128 (or full extent when HW < 128), sized so a
    # single input buffer set is <= ~8 MiB -> double-buffered ~16 MiB, comfortably inside the
    # 32 MiB scoped-VMEM limit requested below (and v7x's 64 MiB physical VMEM).
    bytes_per_pix = C * logits.dtype.itemsize + tgt.dtype.itemsize + w.dtype.itemsize
    tile_cap = max(128, (8 * 1024 * 1024 // bytes_per_pix) // 128 * 128)
    if HW >= 128:
        tile = min(tile_hw, (HW // 128) * 128, tile_cap)
        tile = max(128, (tile // 128) * 128)
    else:
        tile = HW                                   # full-extent block (< 128 lanes)
    n_j = pl.cdiv(HW, tile)

    kernel = functools.partial(_wce_kernel, hw=HW, tile_hw=tile)

    partials = pl.pallas_call(
        kernel,
        out_shape=jax.ShapeDtypeStruct((N * n_j, 1, 128), jnp.float32),
        grid=(N, n_j),
        in_specs=[
            pl.BlockSpec((1, C, tile), lambda n, j: (n, 0, j)),
            pl.BlockSpec((1, 1, tile), lambda n, j: (n, 0, j)),
            pl.BlockSpec((1, 1, tile), lambda n, j: (n, 0, j)),
        ],
        # One independent partial per (n, j) tile: no resident accumulator, both grid axes
        # can be split across TensorCores on v7x.
        out_specs=pl.BlockSpec((1, 1, 128), lambda n, j: (n * n_j + j, 0, 0)),
        compiler_params=pltpu.CompilerParams(
            dimension_semantics=("parallel", "parallel"),
            vmem_limit_bytes=32 * 1024 * 1024,
        ),
    )(logits, tgt, w)

    # torch.mean divides by the total number of pixels (including ignore_index ones).
    return jnp.sum(partials[:, 0, 0]) / jnp.float32(P)


def _reference(output, target, pixel_weight):
    """Pure-JAX reference mirroring the PyTorch module."""
    logits = jnp.transpose(output, (0, 2, 3, 1)).astype(jnp.float32)       # (N,H,W,C)
    logp = jax.nn.log_softmax(logits, axis=-1)
    tgt = target.astype(jnp.int32)
    safe_tgt = jnp.where(tgt == IGNORE_INDEX, 0, tgt)
    nll = -jnp.take_along_axis(logp, safe_tgt[..., None], axis=-1)[..., 0]  # (N,H,W)
    nll = jnp.where(tgt == IGNORE_INDEX, 0.0, nll)
    return jnp.mean(nll * pixel_weight.astype(jnp.float32))


if __name__ == "__main__":
    key = jax.random.PRNGKey(0)
    k1, k2, k3, k4 = jax.random.split(key, 4)

    N, C, H, W = 2, 4, 16, 16
    output = jax.random.normal(k1, (N, C, H, W), dtype=jnp.float32)
    target = jax.random.randint(k2, (N, H, W), 0, C, dtype=jnp.int32)
    # Sprinkle some ignore_index pixels to exercise that path.
    ignore_mask = jax.random.bernoulli(k3, 0.1, (N, H, W))
    target = jnp.where(ignore_mask, IGNORE_INDEX, target)
    pixel_weight = jax.random.uniform(k4, (N, H, W), dtype=jnp.float32)

    result = cross_entropy_2d_pixelwise_weighted(output, target, pixel_weight)
    result = jax.block_until_ready(result)

    ref = _reference(output, target, pixel_weight)
    assert jnp.allclose(result, ref, rtol=1e-5, atol=1e-5), (result, ref)

    print("KERNEL_OK")
</pallas_src>

<mosaic_0001>
module attributes {stable_mosaic.version = 11 : i64} {
  func.func @_wce_kernel(%arg0: i32, %arg1: i32, %arg2: memref<1x4x256xf32, #tpu.memory_space<vmem>>, %arg3: memref<1x1x256xi32, #tpu.memory_space<vmem>>, %arg4: memref<1x1x256xf32, #tpu.memory_space<vmem>>, %arg5: memref<1x1x128xf32, #tpu.memory_space<vmem>>) attributes {dimension_semantics = [#tpu.dimension_semantics<parallel>, #tpu.dimension_semantics<parallel>], iteration_bounds = array<i64: 2, 1>, scalar_prefetch = 0 : i64, scratch_operands = 0 : i64, tpu.core_type = #tpu.core_type<tc>, window_params = [{transform_indices = @transform_0, window_bounds = array<i64: 1, 4, 256>}, {transform_indices = @transform_1, window_bounds = array<i64: 1, 1, 256>}, {transform_indices = @transform_2, window_bounds = array<i64: 1, 1, 256>}, {transform_indices = @transform_3, window_bounds = array<i64: 1, 1, 128>}]} {
    %c0 = arith.constant 0 : index
    %c0_0 = arith.constant 0 : index
    %c0_1 = arith.constant 0 : index
    %0 = vector.load %arg2[%c0, %c0_0, %c0_1] : memref<1x4x256xf32, #tpu.memory_space<vmem>>, vector<1x4x256xf32>
    %1 = vector.shape_cast %0 : vector<1x4x256xf32> to vector<4x256xf32>
    %c0_2 = arith.constant 0 : index
    %c0_3 = arith.constant 0 : index
    %c0_4 = arith.constant 0 : index
    %2 = vector.load %arg3[%c0_2, %c0_3, %c0_4] : memref<1x1x256xi32, #tpu.memory_space<vmem>>, vector<1x1x256xi32>
    %3 = vector.shape_cast %2 : vector<1x1x256xi32> to vector<1x256xi32>
    %c0_5 = arith.constant 0 : index
    %c0_6 = arith.constant 0 : index
    %c0_7 = arith.constant 0 : index
    %4 = vector.load %arg4[%c0_5, %c0_6, %c0_7] : memref<1x1x256xf32, #tpu.memory_space<vmem>>, vector<1x1x256xf32>
    %5 = vector.shape_cast %4 : vector<1x1x256xf32> to vector<1x256xf32>
    %cst = arith.constant dense<0xFF800000> : vector<256xf32>
    %6 = vector.multi_reduction <maximumf>, %1, %cst [0] : vector<4x256xf32> to vector<256xf32>
    %7 = vector.shape_cast %6 : vector<256xf32> to vector<1x256xf32>
    %8 = vector.broadcast %7 : vector<1x256xf32> to vector<4x256xf32>
    %9 = arith.subf %1, %8 : vector<4x256xf32>
    %10 = math.exp %9 : vector<4x256xf32>
    %cst_8 = arith.constant dense<0.000000e+00> : vector<256xf32>
    %11 = vector.multi_reduction <add>, %10, %cst_8 [0] : vector<4x256xf32> to vector<256xf32>
    %12 = vector.shape_cast %11 : vector<256xf32> to vector<1x256xf32>
    %13 = math.log %12 : vector<1x256xf32>
    %14 = arith.addf %13, %7 : vector<1x256xf32>
    %15 = tpu.iota {dimensions = array<i32: 0>} : vector<4x256xi32>
    %16 = vector.broadcast %3 : vector<1x256xi32> to vector<4x256xi32>
    %17 = arith.cmpi eq, %15, %16 : vector<4x256xi32>
    %cst_9 = arith.constant 0.000000e+00 : f32
    %18 = vector.broadcast %cst_9 : f32 to vector<4x256xf32>
    %19 = arith.select %17, %1, %18 : vector<4x256xi1>, vector<4x256xf32>
    %cst_10 = arith.constant dense<0.000000e+00> : vector<256xf32>
    %20 = vector.multi_reduction <add>, %19, %cst_10 [0] : vector<4x256xf32> to vector<256xf32>
    %21 = vector.shape_cast %20 : vector<256xf32> to vector<1x256xf32>
    %22 = arith.subf %14, %21 : vector<1x256xf32>
    %c256_i32 = arith.constant 256 : i32
    %23 = arith.muli %arg1, %c256_i32 : i32
    %24 = tpu.iota {dimensions = array<i32: 1>} : vector<1x256xi32>
    %25 = vector.broadcast %23 : i32 to vector<1x256xi32>
    %26 = arith.addi %25, %24 : vector<1x256xi32>
    %c255_i32 = arith.constant 255 : i32
    %27 = vector.broadcast %c255_i32 : i32 to vector<1x256xi32>
    %28 = arith.cmpi ne, %3, %27 : vector<1x256xi32>
    %c256_i32_11 = arith.constant 256 : i32
    %29 = vector.broadcast %c256_i32_11 : i32 to vector<1x256xi32>
    %30 = arith.cmpi slt, %26, %29 : vector<1x256xi32>
    %31 = arith.andi %28, %30 : vector<1x256xi1>
    %32 = arith.mulf %22, %5 : vector<1x256xf32>
    %cst_12 = arith.constant 0.000000e+00 : f32
    %33 = vector.broadcast %cst_12 : f32 to vector<1x256xf32>
    %34 = arith.select %31, %32, %33 : vector<1x256xi1>, vector<1x256xf32>
    %35 = vector.shape_cast %34 : vector<1x256xf32> to vector<1x1x256xf32>
    %cst_13 = arith.constant dense<0.000000e+00> : vector<1xf32>
    %36 = vector.multi_reduction <add>, %35, %cst_13 [1, 2] : vector<1x1x256xf32> to vector<1xf32>
    %37 = vector.shape_cast %36 : vector<1xf32> to vector<1x1x1xf32>
    %38 = vector.extract %37[0, 0, 0] : f32 from vector<1x1x1xf32>
    %39 = vector.broadcast %38 : f32 to vector<1x1x128xf32>
    %c0_14 = arith.constant 0 : index
    %c0_15 = arith.constant 0 : index
    %c0_16 = arith.constant 0 : index
    %40 = vector.load %arg5[%c0_14, %c0_15, %c0_16] : memref<1x1x128xf32, #tpu.memory_space<vmem>>, vector<1x1x128xf32>
    tpu.vector_store %arg5[%c0_14, %c0_15, %c0_16], %39 {strides = array<i32>} : memref<1x1x128xf32, #tpu.memory_space<vmem>>, vector<1x1x128xf32>,
    return
  }
  func.func @transform_0(%arg0: i32, %arg1: i32) -> (i32, i32, i32) {
    %c0_i32 = arith.constant 0 : i32
    %c0_i32_0 = arith.constant 0 : i32
    return %arg0, %c0_i32, %arg1 : i32, i32, i32
  }
  func.func @transform_1(%arg0: i32, %arg1: i32) -> (i32, i32, i32) {
    %c0_i32 = arith.constant 0 : i32
    %c0_i32_0 = arith.constant 0 : i32
    return %arg0, %c0_i32, %arg1 : i32, i32, i32
  }
  func.func @transform_2(%arg0: i32, %arg1: i32) -> (i32, i32, i32) {
    %c0_i32 = arith.constant 0 : i32
    %c0_i32_0 = arith.constant 0 : i32
    return %arg0, %c0_i32, %arg1 : i32, i32, i32
  }
  func.func @transform_3(%arg0: i32, %arg1: i32) -> (i32, i32, i32) {
    %c1_i32 = arith.constant 1 : i32
    %0 = arith.muli %arg0, %c1_i32 : i32
    %1 = arith.addi %0, %arg1 : i32
    %c0_i32 = arith.constant 0 : i32
    %c0_i32_0 = arith.constant 0 : i32
    %c0_i32_1 = arith.constant 0 : i32
    return %1, %c0_i32, %c0_i32_0 : i32, i32, i32
  }
}

</mosaic_0001>

<bundles_post_ra>
// kernel: cross_entropy_2d_pixelwise_weighted.1
= control target key start
LH: loop header
LB: loop body
LE: loop exit
PB: predicated region body
PF: predicated region fallthrough
CT: control target
= control target key end

     0   :  { %s622_s12 = smov 0   ;;  %s624_s13 = smov 0   ;;  %s699_s0 = inlined_call_operand.vmem [shape: f32[2,4,256], index: 0, kind: input, shape index: {}]   ;;  %s700_s1 = inlined_call_operand.vmem [shape: s32[2,1,256], index: 1, kind: input, shape index: {}]   ;;  %s701_s2 = inlined_call_operand.vmem [shape: f32[2,1,256], index: 2, kind: input, shape index: {}]   ;;  %s702_s3 = inlined_call_operand.vmem [shape: f32[2,1,128], index: 3, kind: output, shape index: {}]  }
   0x1   :  { %s626_s14 = smov 0  }
   0x2 LB: > { %s25_s15 = sadd.s32 1, %s594_s13  ;;  %p533_p0 = scmp.ge.s32.totalorder %s598_s14, 1  ;;  %s598_s14 = sphi %s626_s14, %s13_s14   ;;  %s594_s13 = sphi %s624_s13, %s704_s13   ;;  %s590_s12 = sphi %s622_s12, %s703_s12  }
   0x3   : > { %p27_p1 = scmp.ge.s32.totalorder %s25_s15, 2  ;;  %p190_p2 = scmp.lt.s32.totalorder %s598_s14, 3 }
   0x5   : > { %s706_s15 = smov (%p27_p1, %s25_s15), 0  ;;  %p191_p3 = pnand %p533_p0, %p190_p2 }
   0x6   : > { %p234_p4 = scmp.lt.s32.totalorder (!%p191_p3), %s590_s12, 1 }
   0x7   : > { %194 = sbr.rel (%p191_p3) target bundleno = 302 (0x12e), region = 32 }
   0xc   : > { %s708_s12 = smov (!%p234_p4, %s590_s12), 1  ;;  %vm272_vm0 = vcmask 1043456   ;;  %v317_v18 = vlaneseq  ;;  %v600_v51 = vmov 1966171168   ;;  %v601_v58 = vmov 1  }
   0xd   : > { %s540_s16 = sshll.u32 %s708_s12, 3  ;;  %s536_s20 = sshll.u32 %s708_s12, 1  ;;  %v361_v52 = vunpack.c.l.s4 %v600_v51  ;;  %v359_v59 = vcombine.low %v601_v58, %v601_v58  ;;  %vm419_vm6 = vcmask 1040384  }
   0xe   : > { %s241_s19 = scalar_lea.vmem %s699_s0, %s540_s16  ;;  %v318_v20 = vshrl.u32 %v317_v18, 7  ;;  %s250_s23 = scalar_lea.vmem %s700_s1, %s536_s20 }
   0xf   : > { %v266_v0 = vld [vmem:[%s241_s19] sm:$0xff]  ;;  %v362_v55 = vunpack.c.0.s8 %v361_v52  ;;  %s259_s26 = scalar_lea.vmem %s701_s2, %s536_s20  ;;  %s264_s29 = scalar_lea.vmem %s702_s3, %s708_s12 }
  0x10   : > { %v270_v1 = vcombine.high %v266_v0, %v266_v0  ;;  %v273_v2 = vsel %vm272_vm0, %v266_v0, -inf  ;;  %v660_v21 = vsub.s32 0, %v318_v20  ;;  %v662_v22 = vld [vmem:[%s250_s23] sm:$0x3]  ;;  %v664_v23 = vsub.s32 1, %v318_v20 }
  0x11   : > { %v274_v3 = vrot.slane %v273_v2, 4  ;;  %v365_v60 = vsub.s32 %v362_v55, %v318_v20  ;;  %v268_v63 = vld [vmem:[%s259_s26] sm:$0x3]  ;;  %vm354_vm3 = vcmp.ne.s32.totalorder %v662_v22, 255 }
  0x12   : > { %v280_v4 = vsel %vm272_vm0, %v270_v1, -inf  ;;  %v322_v24 = vrot.slane %v662_v22, %v660_v21  ;;  %v326_v25 = vrot.slane %v662_v22, %v664_v23 }
  0x13   : > { %v275_v5 = vmax.f32 %v273_v2, %v274_v3  ;;  %v281_v6 = vrot.slane %v280_v4, 4  ;;  %v366_v3 = vrot.slane %v359_v59, %v365_v60 }
  0x14   : > { %vm327_vm1 = vcmp.eq.s32.totalorder %v318_v20, %v322_v24  ;;  %vm328_vm2 = vcmp.eq.s32.totalorder %v318_v20, %v326_v25 }
  0x15   : > { %v276_v7 = vrot.slane %v275_v5, 2  ;;  %v282_v8 = vmax.f32 %v280_v4, %v281_v6  ;;  %v329_v30 = vsel %vm327_vm1, %v266_v0, 0.0  ;;  %v330_v34 = vsel %vm328_vm2, %v270_v1, 0.0 }
  0x16   : > { %v331_v35 = vsel %vm272_vm0, %v329_v30, 0.0  ;;  %v338_v38 = vsel %vm272_vm0, %v330_v34, 0.0 }
  0x17   : > { %v277_v9 = vmax.f32 %v275_v5, %v276_v7  ;;  %v283_v10 = vrot.slane %v282_v8, 2  ;;  %v332_v41 = vrot.slane %v331_v35, 4  ;;  %v339_v44 = vrot.slane %v338_v38, 4 }
  0x18   : > { %v380_v7 = vrot.slane %v268_v63, %v660_v21 }
  0x19   : > { %v278_v11 = vrot.slane %v277_v9, 1  ;;  %v284_v12 = vmax.f32 %v282_v8, %v283_v10  ;;  %v333_v47 = vadd.f32 %v332_v41, %v331_v35  ;;  %v340_v49 = vadd.f32 %v339_v44, %v338_v38 }
  0x1a   : > { %v384_v10 = vrot.slane %v268_v63, %v664_v23 }
  0x1b   : > { %v648_v13 = vmax.f32 %v277_v9, %v278_v11  ;;  %v285_v14 = vrot.slane %v284_v12, 1  ;;  %v334_v50 = vrot.slane %v333_v47, 2  ;;  %v341_v53 = vrot.slane %v340_v49, 2 }
  0x1d   : > { %v650_v15 = vmax.f32 %v284_v12, %v285_v14  ;;  %v335_v54 = vadd.f32 %v334_v50, %v333_v47  ;;  %v342_v56 = vadd.f32 %v341_v53, %v340_v49  ;;  %v373_v12 = vrot.slane %v366_v3, %v365_v60 }
  0x1f   : > { %v289_v16 = vcombine.low %v648_v13, %v650_v15  ;;  %v336_v57 = vrot.slane %v335_v54, 1  ;;  %v343_v61 = vrot.slane %v342_v56, 1  ;;  %vm374_vm4 = vcmp.ne.s32.totalorder %v373_v12, 0 }
  0x20   : > { %vm375_vm5 = vmand %vm354_vm3, %vm374_vm4 }
  0x21   : > { %v291_v17 = vsub.f32 %v266_v0, %v289_v16  ;;  %v337_v1 = vadd.f32 %v336_v57, %v335_v54  ;;  %v344_v6 = vadd.f32 %v343_v61, %v342_v56 }
  0x23   : > { %v292_v19 = vmul.f32 1.442695, %v291_v17 }
  0x25   : > { %570 = vpow2.f32 %v292_v19 }
  0x32   : > { %v571_v26 = vpop.eup %570 }
  0x33   : > { %v295_v27 = vcombine.high %v571_v26, %v571_v26  ;;  %v297_v28 = vsel %vm272_vm0, %v571_v26, 0.0 }
  0x34   : > { %v298_v29 = vrot.slane %v297_v28, 4 }
  0x35   : > { %v304_v31 = vsel %vm272_vm0, %v295_v27, 0.0 }
  0x36   : > { %v299_v32 = vadd.f32 %v298_v29, %v297_v28  ;;  %v305_v33 = vrot.slane %v304_v31, 4 }
  0x38   : > { %v300_v36 = vrot.slane %v299_v32, 2  ;;  %v306_v37 = vadd.f32 %v305_v33, %v304_v31 }
  0x3a   : > { %v301_v39 = vadd.f32 %v300_v36, %v299_v32  ;;  %v307_v40 = vrot.slane %v306_v37, 2 }
  0x3c   : > { %v302_v42 = vrot.slane %v301_v39, 1  ;;  %v308_v43 = vadd.f32 %v307_v40, %v306_v37 }
  0x3e   : > { %v303_v45 = vadd.f32 %v302_v42, %v301_v39  ;;  %v309_v46 = vrot.slane %v308_v43, 1 }
  0x40   : > { %v310_v48 = vadd.f32 %v309_v46, %v308_v43  ;;  %572 = vlog2.f32 %v303_v45 }
  0x42   : > { %574 = vlog2.f32 %v310_v48 }
  0x4d   : > { %v573_v62 = vpop.eup %572 }
  0x4e   : > { %v312_v0 = vmul.f32 0.6931472, %v573_v62 }
  0x4f   : > { %v575_v2 = vpop.eup %574 }
  0x50   : > { %v314_v4 = vmul.f32 0.6931472, %v575_v2  ;;  %v315_v5 = vadd.f32 %v312_v0, %v648_v13 }
  0x52   : > { %v316_v8 = vadd.f32 %v314_v4, %v650_v15  ;;  %v345_v9 = vsub.f32 %v315_v5, %v337_v1 }
  0x54   : > { %v346_v11 = vsub.f32 %v316_v8, %v344_v6  ;;  %v387_v14 = vmul.f32 %v380_v7, %v345_v9 }
  0x56   : > { %v388_v16 = vmul.f32 %v384_v10, %v346_v11 }
  0x58   : > { %v391_v17 = vcombine.low %v387_v14, %v388_v16 }
  0x5a   : > { %v398_v18 = vrot.slane %v391_v17, %v365_v60 }
  0x5c   : > { %v405_v19 = vrot.slane %v398_v18, %v365_v60 }
  0x5e   : > { %v407_v13 = vsel %vm375_vm5, %v405_v19, 0.0 }
  0x5f   : > { %v412_v20 = vrot.slane %v407_v13, %v660_v21  ;;  %v416_v15 = vrot.slane %v407_v13, %v664_v23 }
  0x61   : > { %v420_v24 = vsel %vm419_vm6, %v412_v20, 0.0  ;;  %v421_v25 = vsel %vm419_vm6, %v416_v15, 0.0 }
  0x62   : > { %v422_v26 = vadd.f32 %v421_v25, %v420_v24 }
  0x64   : > { %423 = vadd.xlane.f32.xlu0 %v422_v26 }
  0xed   : > { %v424_v27 = vpop.xlane.xlu0 %423 }
  0xee   : > { %v425_v28 = vrot.slane %v424_v27, 4 }
  0xf0   : > { %v426_v29 = vadd.f32 %v425_v28, %v424_v27 }
  0xf2   : > { %v427_v22 = vrot.slane %v426_v29, 2 }
  0xf4   : > { %v428_v30 = vadd.f32 %v427_v22, %v426_v29 }
  0xf6   : > { %v429_v31 = vrot.slane %v428_v30, 1 }
  0xf8   : > { %v430_v32 = vadd.f32 %v429_v31, %v428_v30 }
  0xfa   : > { %541 = vpush %v430_v32 }
 0x12b   : > { %s542_s30 = spop %541 }
 0x12c   : > { %v432_v21 = vstv %s542_s30 }
 0x12d   : > { %433 = vst [vmem:[%s264_s29] sm:$0x1] %v432_v21 }
 0x12e PF: > { %s13_s14 = sadd.s32 1, %s598_s14   ;;  %s703_s12 = smov %s594_s13 }
 0x12f   : > { %p10_p5 = scmp.ge.s32.totalorder %s13_s14, 4   ;;  %s704_s13 = smov %s706_s15 }
 0x131   :  { %12 = sbr.rel (!%p10_p5) target bundleno = 2 (0x2), region = 68 }

</bundles_post_ra>
